<compile_context>
chip_gen: v6e
topology: v6e:2x2x1
jax: 0.10.0
libtpu: 0.0.40
codegen_flags: <defaults>
</compile_context>

<pallas_src>
import functools

import jax
import jax.numpy as jnp
from jax.experimental import pallas as pl
from jax.experimental.pallas import tpu as pltpu


def _round_up(n, m):
    return ((n + m - 1) // m) * m


def _cdiv(a, b):
    return -(-a // b)


# ----------------------------------------------------------------------------
# Per-generation configuration
# ----------------------------------------------------------------------------
def _tpu_config():
    kind = ""
    try:
        kind = jax.devices()[0].device_kind.lower()
    except Exception:
        pass
    if "v7" in kind:
        # 64 MiB VMEM per TensorCore, 2 TCs: modest tiles, headroom, split the grid.
        return dict(tm_cap=512, vmem_bytes=48 * 1024 * 1024,
                    ew_dtype=jnp.bfloat16, min_steps=2)
    if "v6" in kind:
        # 128 MiB VMEM, bf16-capable VPU/EUP: big batch tiles, bf16 elementwise.
        return dict(tm_cap=1024, vmem_bytes=96 * 1024 * 1024,
                    ew_dtype=jnp.bfloat16, min_steps=1)
    if "v5" in kind:
        # 128 MiB VMEM but no bf16 VPU/EUP: big tiles, keep elementwise math in f32.
        return dict(tm_cap=1024, vmem_bytes=96 * 1024 * 1024,
                    ew_dtype=jnp.float32, min_steps=1)
    # Unknown backend (e.g. interpret mode): conservative defaults.
    return dict(tm_cap=512, vmem_bytes=32 * 1024 * 1024,
                ew_dtype=jnp.float32, min_steps=1)


# ----------------------------------------------------------------------------
# Kernel
# ----------------------------------------------------------------------------
def _apply_activation(h, act):
    if act == "relu":
        return jnp.maximum(h, 0.0)
    elif act == "sigmoid":
        return jax.nn.sigmoid(h)
    elif act == "tanh":
        return jnp.tanh(h)
    # unknown / '' -> identity (matches the torch module, which appends nothing)
    return h


def _mlp_kernel(*refs, activations, has_mask):
    """refs = (x_ref, w0, b0, w1, b1, ..., [mask_ref], out_ref).

    x tile: bf16 [TM, d_in_p].  Weights: bf16 [in_p, out_p] (padded rows/cols zero).
    Biases: [1, out_p] in f32 (v5e) or bf16 (v6e/v7x).  Mask: f32 [1, out_p],
    0 for valid output columns and -inf for lane padding.  Out tile: f32 [TM, out_p].
    """
    x_ref = refs[0]
    out_ref = refs[-1]
    mid = refs[1:-1]
    if has_mask:
        mask_ref = mid[-1]
        param_refs = mid[:-1]
    else:
        mask_ref = None
        param_refs = mid
    n_layers = len(param_refs) // 2

    h = x_ref[...]  # bf16

    for i in range(n_layers):
        w = param_refs[2 * i][...]        # bf16 [in_p, out_p]
        b = param_refs[2 * i + 1][...]    # f32 or bf16 [1, out_p]
        # bf16 MXU operands, f32 accumulation; bias/activation in b.dtype
        # (bf16 on v6e/v7x, f32 on v5e).
        acc = jnp.dot(h.astype(jnp.bfloat16), w,
                      preferred_element_type=jnp.float32)
        h = acc.astype(b.dtype) + b
        h = _apply_activation(h, activations[i])

    # Softmax (f32) over the real feature columns only: the additive mask sends
    # padded columns to -inf so they contribute exp(-inf) == 0 to the denominator.
    h = h.astype(jnp.float32)
    if has_mask:
        h = h + mask_ref[...]
    m = jnp.max(h, axis=-1, keepdims=True)
    e = jnp.exp(h - m)
    denom = jnp.sum(e, axis=-1, keepdims=True)
    out_ref[...] = (e * pl.reciprocal(denom, approx=False)).astype(out_ref.dtype)


# ----------------------------------------------------------------------------
# One-time parameter preparation (pad + cast, hoisted out of the forward)
# ----------------------------------------------------------------------------
def prepare_params(params, activations, ew_dtype=jnp.float32):
    """params: list of (W [in,out] f32, b [out] f32).  Returns cached padded params."""
    d_in = params[0][0].shape[0]
    out_dim = params[-1][0].shape[1]
    d_in_p = _round_up(d_in, 128)
    out_p = _round_up(out_dim, 128)

    layers = []
    param_bytes = 0
    for (w, b) in params:
        din, dout = w.shape
        dinp, doutp = _round_up(din, 128), _round_up(dout, 128)
        # Padded weight rows/cols are zero -> padded activation columns (which may be
        # nonzero after e.g. sigmoid) never influence real outputs.
        wp = jnp.zeros((dinp, doutp), jnp.bfloat16).at[:din, :dout].set(
            w.astype(jnp.bfloat16))
        bp = jnp.zeros((1, doutp), ew_dtype).at[0, :dout].set(b.astype(ew_dtype))
        layers.append((wp, bp))
        param_bytes += wp.size * wp.dtype.itemsize + bp.size * bp.dtype.itemsize

    mask = None
    if out_dim % 128 != 0:
        mask = jnp.full((1, out_p), -jnp.inf, jnp.float32).at[0, :out_dim].set(0.0)
        param_bytes += mask.size * 4

    return dict(layers=layers, mask=mask, d_in=d_in, d_in_p=d_in_p,
                out_dim=out_dim, out_p=out_p, activations=tuple(activations),
                param_bytes=param_bytes)


# ----------------------------------------------------------------------------
# Forward
# ----------------------------------------------------------------------------
def simple_mlp_forward(x, prepared, cfg=None):
    """x: [B, d_in] float32;  prepared: output of prepare_params()."""
    if cfg is None:
        cfg = _tpu_config()

    B = x.shape[0]
    d_in = prepared["d_in"]
    d_in_p = prepared["d_in_p"]
    out_dim = prepared["out_dim"]
    out_p = prepared["out_p"]
    acts = prepared["activations"]
    has_mask = prepared["mask"] is not None

    # Batch tiling: pick step count first (avoids ~2x padding for awkward B), then a
    # sublane/MXU-aligned tile that evenly covers the batch.  On v7x force >=2 steps
    # (when the batch is big enough to split) so both TensorCores get work.
    steps = _cdiv(B, cfg["tm_cap"])
    if cfg["min_steps"] > 1 and B >= 16 * cfg["min_steps"]:
        steps = max(steps, cfg["min_steps"])
    rows = _cdiv(B, steps)
    tm_align = 128 if rows >= 128 else 8
    TM = _round_up(rows, tm_align)
    B_pad = TM * steps

    # Zero-padded, lane-dense, bf16 input (halves streamed x bytes; dot is bf16 anyway).
    xp = jnp.zeros((B_pad, d_in_p), jnp.bfloat16).at[:B, :d_in].set(
        x.astype(jnp.bfloat16))

    flat_args = [xp]
    for wp, bp in prepared["layers"]:
        flat_args.append(wp)
        flat_args.append(bp)
    if has_mask:
        flat_args.append(prepared["mask"])

    # Advisory cost estimate.
    flops = sum(2 * B_pad * wp.shape[0] * wp.shape[1] for wp, _ in prepared["layers"])
    trans_per_row = out_p + 1  # softmax exp + reciprocal
    for (_, bp), act in zip(prepared["layers"], acts):
        if act in ("sigmoid", "tanh"):
            trans_per_row += bp.shape[1]
    cost = pl.CostEstimate(
        flops=int(flops),
        transcendentals=int(B_pad * trans_per_row),
        bytes_accessed=int(xp.size * 2 + B_pad * out_p * 4 + prepared["param_bytes"]),
    )

    kernel = functools.partial(_mlp_kernel, activations=acts, has_mask=has_mask)

    def _launch(single_buffer_consts):
        def const_spec(shape):
            # Weights/biases/mask use a constant index_map -> they stay VMEM-resident
            # across all grid steps; single-buffer them (double-buffering a constant
            # block only doubles its VMEM footprint).
            if single_buffer_consts:
                return pl.BlockSpec(shape, lambda i: (0, 0),
                                    pipeline_mode=pl.Buffered(1))
            return pl.BlockSpec(shape, lambda i: (0, 0))

        in_specs = [pl.BlockSpec((TM, d_in_p), lambda i: (i, 0))]
        for wp, bp in prepared["layers"]:
            in_specs.append(const_spec(wp.shape))
            in_specs.append(const_spec(bp.shape))
        if has_mask:
            in_specs.append(const_spec(prepared["mask"].shape))

        return pl.pallas_call(
            kernel,
            out_shape=jax.ShapeDtypeStruct((B_pad, out_p), jnp.float32),
            grid=(steps,),
            in_specs=in_specs,
            out_specs=pl.BlockSpec((TM, out_p), lambda i: (i, 0)),
            compiler_params=pltpu.CompilerParams(
                dimension_semantics=("parallel",),
                vmem_limit_bytes=cfg["vmem_bytes"],
            ),
            cost_estimate=cost,
        )(*flat_args)

    try:
        out = _launch(single_buffer_consts=True)
    except Exception:
        # Fallback if this Pallas version rejects Buffered(1) on inputs; identical
        # numerics, only the constant-block VMEM footprint differs.
        out = _launch(single_buffer_consts=False)

    return out[:B, :out_dim]


# ----------------------------------------------------------------------------
# Deterministic parameter init (matches torch.nn.Linear's U(-1/sqrt(in), 1/sqrt(in)))
# ----------------------------------------------------------------------------
def init_params(key, layers_list):
    params = []
    for (d_in, d_out, _act) in layers_list:
        key, kw, kb = jax.random.split(key, 3)
        bound = 1.0 / (d_in ** 0.5)
        w = jax.random.uniform(kw, (d_in, d_out), jnp.float32, -bound, bound)
        b = jax.random.uniform(kb, (d_out,), jnp.float32, -bound, bound)
        params.append((w, b))
    return params


# ----------------------------------------------------------------------------
# Reference (plain JAX, full f32) for sanity check
# ----------------------------------------------------------------------------
def reference_forward(x, params, activations):
    h = x
    for (w, b), act in zip(params, activations):
        h = h @ w + b
        if act == "relu":
            h = jnp.maximum(h, 0.0)
        elif act == "sigmoid":
            h = jax.nn.sigmoid(h)
        elif act == "tanh":
            h = jnp.tanh(h)
    return jax.nn.softmax(h, axis=-1)


if __name__ == "__main__":
    # SimpleMLP([(16, 32, 'relu'), (32, 32, 'tanh'), (32, 8, 'sigmoid')])
    layers_list = [(16, 32, "relu"), (32, 32, "tanh"), (32, 8, "sigmoid")]
    activations = [l[2] for l in layers_list]

    key = jax.random.PRNGKey(0)
    key, kx = jax.random.split(key)
    batch = 8
    x = jax.random.normal(kx, (batch, layers_list[0][0]), jnp.float32)

    params = init_params(key, layers_list)

    cfg = _tpu_config()
    prepared = prepare_params(params, activations, ew_dtype=cfg["ew_dtype"])

    out = simple_mlp_forward(x, prepared, cfg)
    out = jax.block_until_ready(out)

    ref = reference_forward(x, params, activations)
    assert out.shape == (batch, layers_list[-1][1])
    # bf16 MXU operands (and bf16 bias/activation on v6e/v7x) -> compare against the
    # f32 reference with a tolerance covering bf16 rounding of the logits.
    assert jnp.allclose(out, ref, atol=2e-2, rtol=2e-2), "mismatch vs JAX reference"
    # exact (approx=False) reciprocal -> softmax rows sum to 1 at f32 accuracy
    assert jnp.allclose(jnp.sum(out, axis=-1), jnp.ones((batch,)), atol=2e-3)

    print("KERNEL_OK")
</pallas_src>

<mosaic_0001>
module attributes {stable_mosaic.version = 11 : i64} {
  func.func @_mlp_kernel(%arg0: i32, %arg1: memref<8x128xbf16, #tpu.memory_space<vmem>>, %arg2: memref<128x128xbf16, #tpu.memory_space<vmem>>, %arg3: memref<1x128xf32, #tpu.memory_space<vmem>>, %arg4: memref<128x128xbf16, #tpu.memory_space<vmem>>, %arg5: memref<1x128xf32, #tpu.memory_space<vmem>>, %arg6: memref<128x128xbf16, #tpu.memory_space<vmem>>, %arg7: memref<1x128xf32, #tpu.memory_space<vmem>>, %arg8: memref<1x128xf32, #tpu.memory_space<vmem>>, %arg9: memref<8x128xf32, #tpu.memory_space<vmem>>) attributes {dimension_semantics = [#tpu.dimension_semantics<parallel>], iteration_bounds = array<i64: 1>, scalar_prefetch = 0 : i64, scratch_operands = 0 : i64, tpu.core_type = #tpu.core_type<tc>, window_params = [{transform_indices = @transform_0, window_bounds = array<i64: 8, 128>}, {pipeline_mode = #tpu.pipeline_mode<synchronous>, transform_indices = @transform_1, window_bounds = array<i64: 128, 128>}, {pipeline_mode = #tpu.pipeline_mode<synchronous>, transform_indices = @transform_2, window_bounds = array<i64: 1, 128>}, {pipeline_mode = #tpu.pipeline_mode<synchronous>, transform_indices = @transform_3, window_bounds = array<i64: 128, 128>}, {pipeline_mode = #tpu.pipeline_mode<synchronous>, transform_indices = @transform_4, window_bounds = array<i64: 1, 128>}, {pipeline_mode = #tpu.pipeline_mode<synchronous>, transform_indices = @transform_5, window_bounds = array<i64: 128, 128>}, {pipeline_mode = #tpu.pipeline_mode<synchronous>, transform_indices = @transform_6, window_bounds = array<i64: 1, 128>}, {pipeline_mode = #tpu.pipeline_mode<synchronous>, transform_indices = @transform_7, window_bounds = array<i64: 1, 128>}, {transform_indices = @transform_8, window_bounds = array<i64: 8, 128>}]} {
    %c0 = arith.constant 0 : index
    %c0_0 = arith.constant 0 : index
    %0 = vector.load %arg1[%c0, %c0_0] : memref<8x128xbf16, #tpu.memory_space<vmem>>, vector<8x128xbf16>
    %c0_1 = arith.constant 0 : index
    %c0_2 = arith.constant 0 : index
    %1 = vector.load %arg2[%c0_1, %c0_2] : memref<128x128xbf16, #tpu.memory_space<vmem>>, vector<128x128xbf16>
    %c0_3 = arith.constant 0 : index
    %c0_4 = arith.constant 0 : index
    %2 = vector.load %arg3[%c0_3, %c0_4] : memref<1x128xf32, #tpu.memory_space<vmem>>, vector<1x128xf32>
    %cst = arith.constant dense<0.000000e+00> : vector<8x128xf32>
    %3 = tpu.matmul %0, %1, %cst {dimension_numbers = #tpu.dot_dimension_numbers<[1], [0], [0], [1], [0, 0, 1, 1], [], []>} : vector<8x128xbf16>, vector<128x128xbf16>, vector<8x128xf32> -> vector<8x128xf32>
    %4 = vector.broadcast %2 : vector<1x128xf32> to vector<8x128xf32>
    %5 = arith.addf %3, %4 : vector<8x128xf32>
    %cst_5 = arith.constant 0.000000e+00 : f32
    %6 = vector.broadcast %cst_5 : f32 to vector<8x128xf32>
    %7 = arith.maximumf %5, %6 : vector<8x128xf32>
    %c0_6 = arith.constant 0 : index
    %c0_7 = arith.constant 0 : index
    %8 = vector.load %arg4[%c0_6, %c0_7] : memref<128x128xbf16, #tpu.memory_space<vmem>>, vector<128x128xbf16>
    %c0_8 = arith.constant 0 : index
    %c0_9 = arith.constant 0 : index
    %9 = vector.load %arg5[%c0_8, %c0_9] : memref<1x128xf32, #tpu.memory_space<vmem>>, vector<1x128xf32>
    %10 = arith.truncf %7 : vector<8x128xf32> to vector<8x128xbf16>
    %cst_10 = arith.constant dense<0.000000e+00> : vector<8x128xf32>
    %11 = tpu.matmul %10, %8, %cst_10 {dimension_numbers = #tpu.dot_dimension_numbers<[1], [0], [0], [1], [0, 0, 1, 1], [], []>} : vector<8x128xbf16>, vector<128x128xbf16>, vector<8x128xf32> -> vector<8x128xf32>
    %12 = vector.broadcast %9 : vector<1x128xf32> to vector<8x128xf32>
    %13 = arith.addf %11, %12 : vector<8x128xf32>
    %14 = math.tanh %13 : vector<8x128xf32>
    %c0_11 = arith.constant 0 : index
    %c0_12 = arith.constant 0 : index
    %15 = vector.load %arg6[%c0_11, %c0_12] : memref<128x128xbf16, #tpu.memory_space<vmem>>, vector<128x128xbf16>
    %c0_13 = arith.constant 0 : index
    %c0_14 = arith.constant 0 : index
    %16 = vector.load %arg7[%c0_13, %c0_14] : memref<1x128xf32, #tpu.memory_space<vmem>>, vector<1x128xf32>
    %17 = arith.truncf %14 : vector<8x128xf32> to vector<8x128xbf16>
    %cst_15 = arith.constant dense<0.000000e+00> : vector<8x128xf32>
    %18 = tpu.matmul %17, %15, %cst_15 {dimension_numbers = #tpu.dot_dimension_numbers<[1], [0], [0], [1], [0, 0, 1, 1], [], []>} : vector<8x128xbf16>, vector<128x128xbf16>, vector<8x128xf32> -> vector<8x128xf32>
    %19 = vector.broadcast %16 : vector<1x128xf32> to vector<8x128xf32>
    %20 = arith.addf %18, %19 : vector<8x128xf32>
    %21 = arith.negf %20 : vector<8x128xf32>
    %22 = math.exp %21 : vector<8x128xf32>
    %cst_16 = arith.constant 1.000000e+00 : f32
    %23 = vector.broadcast %cst_16 : f32 to vector<8x128xf32>
    %24 = arith.addf %23, %22 : vector<8x128xf32>
    %25 = arith.divf %23, %24 : vector<8x128xf32>
    %c0_17 = arith.constant 0 : index
    %c0_18 = arith.constant 0 : index
    %26 = vector.load %arg8[%c0_17, %c0_18] : memref<1x128xf32, #tpu.memory_space<vmem>>, vector<1x128xf32>
    %27 = vector.broadcast %26 : vector<1x128xf32> to vector<8x128xf32>
    %28 = arith.addf %25, %27 : vector<8x128xf32>
    %cst_19 = arith.constant dense<0xFF800000> : vector<8xf32>
    %29 = vector.multi_reduction <maximumf>, %28, %cst_19 [1] : vector<8x128xf32> to vector<8xf32>
    %30 = vector.shape_cast %29 : vector<8xf32> to vector<8x1xf32>
    %31 = vector.broadcast %30 : vector<8x1xf32> to vector<8x128xf32>
    %32 = arith.subf %28, %31 : vector<8x128xf32>
    %33 = math.exp %32 : vector<8x128xf32>
    %cst_20 = arith.constant dense<0.000000e+00> : vector<8xf32>
    %34 = vector.multi_reduction <add>, %33, %cst_20 [1] : vector<8x128xf32> to vector<8xf32>
    %35 = vector.shape_cast %34 : vector<8xf32> to vector<8x1xf32>
    %36 = tpu.reciprocal %35 : vector<8x1xf32> -> vector<8x1xf32>
    %37 = vector.broadcast %36 : vector<8x1xf32> to vector<8x128xf32>
    %38 = arith.mulf %33, %37 : vector<8x128xf32>
    %c0_21 = arith.constant 0 : index
    %c0_22 = arith.constant 0 : index
    %39 = vector.load %arg9[%c0_21, %c0_22] : memref<8x128xf32, #tpu.memory_space<vmem>>, vector<8x128xf32>
    tpu.vector_store %arg9[%c0_21, %c0_22], %38 {strides = array<i32>} : memref<8x128xf32, #tpu.memory_space<vmem>>, vector<8x128xf32>,
    return
  }
  func.func @transform_0(%arg0: i32) -> (i32, i32) {
    %c0_i32 = arith.constant 0 : i32
    %c0_i32_0 = arith.constant 0 : i32
    return %arg0, %c0_i32 : i32, i32
  }
  func.func @transform_1(%arg0: i32) -> (i32, i32) {
    %c0_i32 = arith.constant 0 : i32
    %c0_i32_0 = arith.constant 0 : i32
    %c0_i32_1 = arith.constant 0 : i32
    return %c0_i32, %c0_i32_0 : i32, i32
  }
  func.func @transform_2(%arg0: i32) -> (i32, i32) {
    %c0_i32 = arith.constant 0 : i32
    %c0_i32_0 = arith.constant 0 : i32
    %c0_i32_1 = arith.constant 0 : i32
    return %c0_i32, %c0_i32_0 : i32, i32
  }
  func.func @transform_3(%arg0: i32) -> (i32, i32) {
    %c0_i32 = arith.constant 0 : i32
    %c0_i32_0 = arith.constant 0 : i32
    %c0_i32_1 = arith.constant 0 : i32
    return %c0_i32, %c0_i32_0 : i32, i32
  }
  func.func @transform_4(%arg0: i32) -> (i32, i32) {
    %c0_i32 = arith.constant 0 : i32
    %c0_i32_0 = arith.constant 0 : i32
    %c0_i32_1 = arith.constant 0 : i32
    return %c0_i32, %c0_i32_0 : i32, i32
  }
  func.func @transform_5(%arg0: i32) -> (i32, i32) {
    %c0_i32 = arith.constant 0 : i32
    %c0_i32_0 = arith.constant 0 : i32
    %c0_i32_1 = arith.constant 0 : i32
    return %c0_i32, %c0_i32_0 : i32, i32
  }
  func.func @transform_6(%arg0: i32) -> (i32, i32) {
    %c0_i32 = arith.constant 0 : i32
    %c0_i32_0 = arith.constant 0 : i32
    %c0_i32_1 = arith.constant 0 : i32
    return %c0_i32, %c0_i32_0 : i32, i32
  }
  func.func @transform_7(%arg0: i32) -> (i32, i32) {
    %c0_i32 = arith.constant 0 : i32
    %c0_i32_0 = arith.constant 0 : i32
    %c0_i32_1 = arith.constant 0 : i32
    return %c0_i32, %c0_i32_0 : i32, i32
  }
  func.func @transform_8(%arg0: i32) -> (i32, i32) {
    %c0_i32 = arith.constant 0 : i32
    %c0_i32_0 = arith.constant 0 : i32
    return %arg0, %c0_i32 : i32, i32
  }
}

module attributes {stable_mosaic.version = 11 : i64} {
  func.func @_mlp_kernel(%arg0: i32, %arg1: memref<8x128xbf16, #tpu.memory_space<vmem>>, %arg2: memref<128x128xbf16, #tpu.memory_space<vmem>>, %arg3: memref<1x128xf32, #tpu.memory_space<vmem>>, %arg4: memref<128x128xbf16, #tpu.memory_space<vmem>>, %arg5: memref<1x128xf32, #tpu.memory_space<vmem>>, %arg6: memref<128x128xbf16, #tpu.memory_space<vmem>>, %arg7: memref<1x128xf32, #tpu.memory_space<vmem>>, %arg8: memref<1x128xf32, #tpu.memory_space<vmem>>, %arg9: memref<8x128xf32, #tpu.memory_space<vmem>>) attributes {dimension_semantics = [#tpu.dimension_semantics<parallel>], iteration_bounds = array<i64: 1>, scalar_prefetch = 0 : i64, scratch_operands = 0 : i64, tpu.core_type = #tpu.core_type<tc>, window_params = [{transform_indices = @transform_0, window_bounds = array<i64: 8, 128>}, {pipeline_mode = #tpu.pipeline_mode<synchronous>, transform_indices = @transform_1, window_bounds = array<i64: 128, 128>}, {pipeline_mode = #tpu.pipeline_mode<synchronous>, transform_indices = @transform_2, window_bounds = array<i64: 1, 128>}, {pipeline_mode = #tpu.pipeline_mode<synchronous>, transform_indices = @transform_3, window_bounds = array<i64: 128, 128>}, {pipeline_mode = #tpu.pipeline_mode<synchronous>, transform_indices = @transform_4, window_bounds = array<i64: 1, 128>}, {pipeline_mode = #tpu.pipeline_mode<synchronous>, transform_indices = @transform_5, window_bounds = array<i64: 128, 128>}, {pipeline_mode = #tpu.pipeline_mode<synchronous>, transform_indices = @transform_6, window_bounds = array<i64: 1, 128>}, {pipeline_mode = #tpu.pipeline_mode<synchronous>, transform_indices = @transform_7, window_bounds = array<i64: 1, 128>}, {transform_indices = @transform_8, window_bounds = array<i64: 8, 128>}]} {
    %c0 = arith.constant 0 : index
    %c0_0 = arith.constant 0 : index
    %0 = vector.load %arg1[%c0, %c0_0] : memref<8x128xbf16, #tpu.memory_space<vmem>>, vector<8x128xbf16>
    %c0_1 = arith.constant 0 : index
    %c0_2 = arith.constant 0 : index
    %1 = vector.load %arg2[%c0_1, %c0_2] : memref<128x128xbf16, #tpu.memory_space<vmem>>, vector<128x128xbf16>
    %c0_3 = arith.constant 0 : index
    %c0_4 = arith.constant 0 : index
    %2 = vector.load %arg3[%c0_3, %c0_4] : memref<1x128xf32, #tpu.memory_space<vmem>>, vector<1x128xf32>
    %cst = arith.constant dense<0.000000e+00> : vector<8x128xf32>
    %3 = tpu.matmul %0, %1, %cst {dimension_numbers = #tpu.dot_dimension_numbers<[1], [0], [0], [1], [0, 0, 1, 1], [], []>} : vector<8x128xbf16>, vector<128x128xbf16>, vector<8x128xf32> -> vector<8x128xf32>
    %4 = vector.broadcast %2 : vector<1x128xf32> to vector<8x128xf32>
    %5 = arith.addf %3, %4 : vector<8x128xf32>
    %cst_5 = arith.constant 0.000000e+00 : f32
    %6 = vector.broadcast %cst_5 : f32 to vector<8x128xf32>
    %7 = arith.maximumf %5, %6 : vector<8x128xf32>
    %c0_6 = arith.constant 0 : index
    %c0_7 = arith.constant 0 : index
    %8 = vector.load %arg4[%c0_6, %c0_7] : memref<128x128xbf16, #tpu.memory_space<vmem>>, vector<128x128xbf16>
    %c0_8 = arith.constant 0 : index
    %c0_9 = arith.constant 0 : index
    %9 = vector.load %arg5[%c0_8, %c0_9] : memref<1x128xf32, #tpu.memory_space<vmem>>, vector<1x128xf32>
    %10 = arith.truncf %7 : vector<8x128xf32> to vector<8x128xbf16>
    %cst_10 = arith.constant dense<0.000000e+00> : vector<8x128xf32>
    %11 = tpu.matmul %10, %8, %cst_10 {dimension_numbers = #tpu.dot_dimension_numbers<[1], [0], [0], [1], [0, 0, 1, 1], [], []>} : vector<8x128xbf16>, vector<128x128xbf16>, vector<8x128xf32> -> vector<8x128xf32>
    %12 = vector.broadcast %9 : vector<1x128xf32> to vector<8x128xf32>
    %13 = arith.addf %11, %12 : vector<8x128xf32>
    %14 = math.tanh %13 : vector<8x128xf32>
    %c0_11 = arith.constant 0 : index
    %c0_12 = arith.constant 0 : index
    %15 = vector.load %arg6[%c0_11, %c0_12] : memref<128x128xbf16, #tpu.memory_space<vmem>>, vector<128x128xbf16>
    %c0_13 = arith.constant 0 : index
    %c0_14 = arith.constant 0 : index
    %16 = vector.load %arg7[%c0_13, %c0_14] : memref<1x128xf32, #tpu.memory_space<vmem>>, vector<1x128xf32>
    %17 = arith.truncf %14 : vector<8x128xf32> to vector<8x128xbf16>
    %cst_15 = arith.constant dense<0.000000e+00> : vector<8x128xf32>
    %18 = tpu.matmul %17, %15, %cst_15 {dimension_numbers = #tpu.dot_dimension_numbers<[1], [0], [0], [1], [0, 0, 1, 1], [], []>} : vector<8x128xbf16>, vector<128x128xbf16>, vector<8x128xf32> -> vector<8x128xf32>
    %19 = vector.broadcast %16 : vector<1x128xf32> to vector<8x128xf32>
    %20 = arith.addf %18, %19 : vector<8x128xf32>
    %21 = arith.negf %20 : vector<8x128xf32>
    %22 = math.exp %21 : vector<8x128xf32>
    %cst_16 = arith.constant 1.000000e+00 : f32
    %23 = vector.broadcast %cst_16 : f32 to vector<8x128xf32>
    %24 = arith.addf %23, %22 : vector<8x128xf32>
    %25 = arith.divf %23, %24 : vector<8x128xf32>
    %c0_17 = arith.constant 0 : index
    %c0_18 = arith.constant 0 : index
    %26 = vector.load %arg8[%c0_17, %c0_18] : memref<1x128xf32, #tpu.memory_space<vmem>>, vector<1x128xf32>
    %27 = vector.broadcast %26 : vector<1x128xf32> to vector<8x128xf32>
    %28 = arith.addf %25, %27 : vector<8x128xf32>
    %cst_19 = arith.constant dense<0xFF800000> : vector<8xf32>
    %29 = vector.multi_reduction <maximumf>, %28, %cst_19 [1] : vector<8x128xf32> to vector<8xf32>
    %30 = vector.shape_cast %29 : vector<8xf32> to vector<8x1xf32>
    %31 = vector.broadcast %30 : vector<8x1xf32> to vector<8x128xf32>
    %32 = arith.subf %28, %31 : vector<8x128xf32>
    %33 = math.exp %32 : vector<8x128xf32>
    %cst_20 = arith.constant dense<0.000000e+00> : vector<8xf32>
    %34 = vector.multi_reduction <add>, %33, %cst_20 [1] : vector<8x128xf32> to vector<8xf32>
    %35 = vector.shape_cast %34 : vector<8xf32> to vector<8x1xf32>
    %36 = tpu.reciprocal %35 : vector<8x1xf32> -> vector<8x1xf32>
    %37 = vector.broadcast %36 : vector<8x1xf32> to vector<8x128xf32>
    %38 = arith.mulf %33, %37 : vector<8x128xf32>
    %c0_21 = arith.constant 0 : index
    %c0_22 = arith.constant 0 : index
    %39 = vector.load %arg9[%c0_21, %c0_22] : memref<8x128xf32, #tpu.memory_space<vmem>>, vector<8x128xf32>
    tpu.vector_store %arg9[%c0_21, %c0_22], %38 {strides = array<i32>} : memref<8x128xf32, #tpu.memory_space<vmem>>, vector<8x128xf32>,
    return
  }
  func.func @transform_0(%arg0: i32) -> (i32, i32) {
    %c0_i32 = arith.constant 0 : i32
    %c0_i32_0 = arith.constant 0 : i32
    return %arg0, %c0_i32 : i32, i32
  }
  func.func @transform_1(%arg0: i32) -> (i32, i32) {
    %c0_i32 = arith.constant 0 : i32
    %c0_i32_0 = arith.constant 0 : i32
    %c0_i32_1 = arith.constant 0 : i32
    return %c0_i32, %c0_i32_0 : i32, i32
  }
  func.func @transform_2(%arg0: i32) -> (i32, i32) {
    %c0_i32 = arith.constant 0 : i32
    %c0_i32_0 = arith.constant 0 : i32
    %c0_i32_1 = arith.constant 0 : i32
    return %c0_i32, %c0_i32_0 : i32, i32
  }
  func.func @transform_3(%arg0: i32) -> (i32, i32) {
    %c0_i32 = arith.constant 0 : i32
    %c0_i32_0 = arith.constant 0 : i32
    %c0_i32_1 = arith.constant 0 : i32
    return %c0_i32, %c0_i32_0 : i32, i32
  }
  func.func @transform_4(%arg0: i32) -> (i32, i32) {
    %c0_i32 = arith.constant 0 : i32
    %c0_i32_0 = arith.constant 0 : i32
    %c0_i32_1 = arith.constant 0 : i32
    return %c0_i32, %c0_i32_0 : i32, i32
  }
  func.func @transform_5(%arg0: i32) -> (i32, i32) {
    %c0_i32 = arith.constant 0 : i32
    %c0_i32_0 = arith.constant 0 : i32
    %c0_i32_1 = arith.constant 0 : i32
    return %c0_i32, %c0_i32_0 : i32, i32
  }
  func.func @transform_6(%arg0: i32) -> (i32, i32) {
    %c0_i32 = arith.constant 0 : i32
    %c0_i32_0 = arith.constant 0 : i32
    %c0_i32_1 = arith.constant 0 : i32
    return %c0_i32, %c0_i32_0 : i32, i32
  }
  func.func @transform_7(%arg0: i32) -> (i32, i32) {
    %c0_i32 = arith.constant 0 : i32
    %c0_i32_0 = arith.constant 0 : i32
    %c0_i32_1 = arith.constant 0 : i32
    return %c0_i32, %c0_i32_0 : i32, i32
  }
  func.func @transform_8(%arg0: i32) -> (i32, i32) {
    %c0_i32 = arith.constant 0 : i32
    %c0_i32_0 = arith.constant 0 : i32
    return %arg0, %c0_i32 : i32, i32
  }
}

</mosaic_0001>

<bundles_post_ra>
// kernel: tpu_custom_call.1
= control target key start
LH: loop header
LB: loop body
LE: loop exit
PB: predicated region body
PF: predicated region fallthrough
CT: control target
= control target key end

     0   :  { %13 = vsyncpa [#allocation3], 0  ;;  %s850_s0 = inlined_call_operand.hbm [shape: bf16[8,128], index: 0, kind: input, shape index: {}]   ;;  %s851_s1 = inlined_call_operand.hbm [shape: bf16[128,128], index: 1, kind: input, shape index: {}]   ;;  %s852_s2 = inlined_call_operand.vmem [shape: f32[1,128], index: 2, kind: input, shape index: {}]   ;;  %s853_s3 = inlined_call_operand.hbm [shape: bf16[128,128], index: 3, kind: input, shape index: {}]   ;;  %s854_s4 = inlined_call_operand.vmem [shape: f32[1,128], index: 4, kind: input, shape index: {}]   ;;  %s855_s5 = inlined_call_operand.hbm [shape: bf16[128,128], index: 5, kind: input, shape index: {}]   ;;  %s856_s6 = inlined_call_operand.vmem [shape: f32[1,128], index: 6, kind: input, shape index: {}]   ;;  %s857_s7 = inlined_call_operand.vmem [shape: f32[1,128], index: 7, kind: input, shape index: {}]   ;;  %s858_s8 = inlined_call_operand.hbm [shape: f32[8,128], index: 8, kind: output, shape index: {}]  }
   0x1   :  { %14 = vsyncpa [#allocation6], 0 }
   0x2   :  { %15 = vsyncpa [#allocation9], 0 }
   0x3   :  { %16 = vsyncpa [#allocation4], 0  ;;  %s730_s27 = smov [#allocation5]  }
   0x4   :  { %s32_s28 = sshll.u32 %s730_s27, 4  ;;  %s33_s28 = int_to_ptr.vmem [resolvable:$true] %s32_s28 }
   0x5   :  { %s630_s29 = scalar_lea.vmem %s33_s28, 1024  ;;  %p635_p1 = scmp.lt.s32.totalorder %s33_s28, %s33_s28 }
   0x6   :  { %p631_p0 = scmp.ne.s32.totalorder %s33_s28, %s630_s29  ;;  %p636_p2 = scmp.lt.s32.totalorder %s630_s29, %s630_s29 }
   0x8   :  { %p637_p3 = por %p636_p2, %p635_p1 }
   0xa   :  { %p638_p4 = pnand %p637_p3, %p631_p0 }
   0xc   :  { %641 = shalt.err (!%p638_p4)
}
   0xd   :  { %s731_s30 = smov 64   ;;  %s732_s9 = smov 4  }
   0xe   :  { %38 = dma.hbm_to_vmem [thread:$0]  %s851_s1, 1024, %s33_s28, [#allocation6], %s731_s30, %s731_s30, %s732_s9  }
   0xf   :  { %s733_s12 = smov [#allocation2]   ;;  %s734_s14 = smov [#allocation7]  }
  0x10   :  { %s23_s13 = sshll.u32 %s733_s12, 4  ;;  %s46_s15 = sshll.u32 %s734_s14, 4  ;;  %s24_s13 = int_to_ptr.vmem [resolvable:$true] %s23_s13  ;;  %s47_s15 = int_to_ptr.vmem [resolvable:$true] %s46_s15 }
  0x11   :  { %s650_s16 = scalar_lea.vmem %s24_s13, 64  ;;  %p655_p6 = scmp.lt.s32.totalorder %s24_s13, %s24_s13 }
  0x12   :  { %p651_p5 = scmp.ne.s32.totalorder %s24_s13, %s650_s16  ;;  %p656_p7 = scmp.lt.s32.totalorder %s650_s16, %s650_s16 }
  0x14   :  { %p657_p8 = por %p656_p7, %p655_p6 }
  0x16   :  { %p658_p9 = pnand %p657_p8, %p651_p5 }
  0x18   :  { %661 = shalt.err (!%p658_p9)
}
  0x19   :  { %26 = dma.hbm_to_vmem [thread:$0]  %s850_s0, 64, %s24_s13, [#allocation3]  }
  0x1a   :  { %s670_s19 = scalar_lea.vmem %s47_s15, 1024  ;;  %p675_p11 = scmp.lt.s32.totalorder %s47_s15, %s47_s15 }
  0x1b   :  { %p671_p10 = scmp.ne.s32.totalorder %s47_s15, %s670_s19  ;;  %p676_p12 = scmp.lt.s32.totalorder %s670_s19, %s670_s19 }
  0x1d   :  { %p677_p13 = por %p676_p12, %p675_p11 }
  0x1f   :  { %p678_p0 = pnand %p677_p13, %p671_p10 }
  0x21   :  { %681 = shalt.err (!%p678_p0)
}
  0x22   :  { %52 = dma.hbm_to_vmem [thread:$0]  %s853_s3, 1024, %s47_s15, [#allocation6], %s731_s30, %s731_s30, %s732_s9  }
  0x23   :  { %s735_s21 = smov [#allocation8]  }
  0x24   :  { %s60_s22 = sshll.u32 %s735_s21, 4  ;;  %s61_s22 = int_to_ptr.vmem [resolvable:$true] %s60_s22 }
  0x25   :  { %s690_s23 = scalar_lea.vmem %s61_s22, 1024  ;;  %p695_p2 = scmp.lt.s32.totalorder %s61_s22, %s61_s22 }
  0x26   :  { %p691_p1 = scmp.ne.s32.totalorder %s61_s22, %s690_s23  ;;  %p696_p3 = scmp.lt.s32.totalorder %s690_s23, %s690_s23 }
  0x28   :  { %p697_p4 = por %p696_p3, %p695_p2 }
  0x2a   :  { %p698_p5 = pnand %p697_p4, %p691_p1 }
  0x2c   :  { %701 = shalt.err (!%p698_p5)
}
  0x2d   :  { %66 = dma.hbm_to_vmem [thread:$0]  %s855_s5, 1024, %s61_s22, [#allocation9], %s731_s30, %s731_s30, %s732_s9  }
  0x2e   :  { %722 = dma.done.wait [#allocation3], 64  }
  0x2f   :  { %723 = vsyncadd [#allocation3], 4294967232 }
  0x30   :  { %724 = dma.done.wait [#allocation6], 2048  }
  0x31   :  { %725 = vsyncadd [#allocation6], 4294965248 }
  0x32   :  { %726 = dma.done.wait [#allocation9], 1024  }
  0x33   :  { %727 = vsyncadd [#allocation9], 4294966272  ;;  %v736_v0 = vmov 0.0   ;;  %vm737_vm0 = vmmov 0   ;;  %v588_v1 = vld [vmem:[#allocation5 + $0x38] sm:$0xff]   ;;  %v589_v2 = vld [vmem:[#allocation5 + $0x30] sm:$0xff]  }
  0x34   :  { %519 = vmatprep.subr.bf16.mxu0 %v736_v0  ;;  %535 = vmatprep.mubr.msk.bf16.mxu0 %vm737_vm0, %v736_v0  ;;  %v590_v3 = vld [vmem:[#allocation5 + $0x28] sm:$0xff]   ;;  %v596_v4 = vld [vmem:[#allocation7 + $0x38] sm:$0xff]   ;;  %v591_v5 = vld [vmem:[#allocation5 + $0x20] sm:$0xff]  }
  0x35   :  { %539 = vmatprep.subr.bf16.mxu1 %v736_v0  ;;  %555 = vmatprep.mubr.msk.bf16.mxu1 %vm737_vm0, %v736_v0  ;;  %v597_v6 = vld [vmem:[#allocation7 + $0x30] sm:$0xff]   ;;  %v592_v7 = vld [vmem:[#allocation5 + $0x18] sm:$0xff]   ;;  %v598_v8 = vld [vmem:[#allocation7 + $0x28] sm:$0xff]  }
  0x36   :  { %520 = vmatpush3.bf16.msra.mxu0 %v588_v1  ;;  %540 = vmatpush3.bf16.msra.mxu1 %v596_v4  ;;  %v593_v9 = vld [vmem:[#allocation5 + $0x10] sm:$0xff]   ;;  %v599_v10 = vld [vmem:[#allocation7 + $0x20] sm:$0xff]   ;;  %v594_v11 = vld [vmem:[#allocation5 + $0x8] sm:$0xff]  }
  0x37   :  { %521 = vmatprep.subr.bf16.mxu0 %v736_v0  ;;  %541 = vmatprep.subr.bf16.mxu1 %v736_v0  ;;  %v600_v12 = vld [vmem:[#allocation7 + $0x18] sm:$0xff]   ;;  %v595_v13 = vld [vmem:[#allocation5] sm:$0xff]   ;;  %v601_v14 = vld [vmem:[#allocation7 + $0x10] sm:$0xff]  }
  0x38   :  { %v84_v15 = vld [vmem:[#allocation2] sm:$0xf]  ;;  %v602_v16 = vld [vmem:[#allocation7 + $0x8] sm:$0xff]   ;;  %v603_v17 = vld [vmem:[#allocation7] sm:$0xff]  }
  0x39   :  { %v604_v18 = vld [vmem:[#allocation8 + $0x38] sm:$0xff]   ;;  %v605_v19 = vld [vmem:[#allocation8 + $0x30] sm:$0xff]   ;;  %v606_v20 = vld [vmem:[#allocation8 + $0x28] sm:$0xff]  }
  0x3a   :  { %522 = vmatpush3.bf16.msra.mxu0 %v589_v2  ;;  %542 = vmatpush3.bf16.msra.mxu1 %v597_v6  ;;  %v463_v21 = vld [vmem:[%s852_s2] ss:$0 sm:$0xff]  ;;  %v607_v29 = vld [vmem:[#allocation8 + $0x20] sm:$0xff]   ;;  %v609_v31 = vld [vmem:[#allocation8 + $0x10] sm:$0xff]  }
  0x3b   :  { %523 = vmatprep.subr.bf16.mxu0 %v736_v0  ;;  %543 = vmatprep.subr.bf16.mxu1 %v736_v0  ;;  %v608_v30 = vld [vmem:[#allocation8 + $0x18] sm:$0xff]   ;;  %v610_v32 = vld [vmem:[#allocation8 + $0x8] sm:$0xff]   ;;  %v611_v33 = vld [vmem:[#allocation8] sm:$0xff]  }
  0x3c   :  { %v472_v34 = vld [vmem:[%s854_s4] ss:$0 sm:$0xff] }
  0x3d   :  { %v481_v42 = vld [vmem:[%s856_s6] ss:$0 sm:$0xff]  ;;  %s738_s6 = smov [#allocation10]  }
  0x3e   :  { %524 = vmatpush3.bf16.msra.mxu0 %v590_v3  ;;  %544 = vmatpush3.bf16.msra.mxu1 %v598_v8  ;;  %v491_v51 = vld [vmem:[%s857_s7] ss:$0 sm:$0xff]  ;;  %s452_s29 = sshll.u32 %s738_s6, 4  ;;  %s453_s29 = int_to_ptr.vmem [resolvable:$true] %s452_s29 }
  0x3f   :  { %525 = vmatprep.subr.bf16.mxu0 %v736_v0  ;;  %545 = vmatprep.subr.bf16.mxu1 %v736_v0  ;;  %s702_s30 = scalar_lea.vmem %s453_s29, 128  ;;  %p707_p7 = scmp.lt.s32.totalorder %s453_s29, %s453_s29 }
  0x40   :  { %p703_p6 = scmp.ne.s32.totalorder %s453_s29, %s702_s30  ;;  %p708_p8 = scmp.lt.s32.totalorder %s702_s30, %s702_s30 }
  0x42   :  { %526 = vmatpush3.bf16.msra.mxu0 %v591_v5  ;;  %546 = vmatpush3.bf16.msra.mxu1 %v599_v10  ;;  %p709_p9 = por %p708_p8, %p707_p7 }
  0x43   :  { %527 = vmatprep.subr.bf16.mxu0 %v736_v0  ;;  %547 = vmatprep.subr.bf16.mxu1 %v736_v0 }
  0x44   :  { %p710_p10 = pnand %p709_p9, %p703_p6 }
  0x46   :  { %528 = vmatpush3.bf16.msra.mxu0 %v592_v7  ;;  %548 = vmatpush3.bf16.msra.mxu1 %v600_v12 }
  0x47   :  { %529 = vmatprep.subr.bf16.mxu0 %v736_v0  ;;  %549 = vmatprep.subr.bf16.mxu1 %v736_v0 }
  0x4a   :  { %530 = vmatpush3.bf16.msra.mxu0 %v593_v9  ;;  %550 = vmatpush3.bf16.msra.mxu1 %v601_v14 }
  0x4b   :  { %531 = vmatprep.subr.bf16.mxu0 %v736_v0  ;;  %551 = vmatprep.subr.bf16.mxu1 %v736_v0 }
  0x4e   :  { %532 = vmatpush3.bf16.msra.mxu0 %v594_v11  ;;  %552 = vmatpush3.bf16.msra.mxu1 %v602_v16 }
  0x4f   :  { %533 = vmatprep.subr.bf16.mxu0 %v736_v0  ;;  %553 = vmatprep.subr.bf16.mxu1 %v736_v0 }
  0x52   :  { %534 = vmatpush3.bf16.msra.mxu0 %v595_v13  ;;  %554 = vmatpush3.bf16.msra.mxu1 %v603_v17 }
  0x53   :  { %559 = vmatprep.subr.bf16.mxu0 %v736_v0 }
  0x55   :  { %536 = vmatmul.mubr.bf16.vlgmr.msra.gmra.mxu0 %v84_v15 }
  0x56   :  { %575 = vmatprep.mubr.msk.bf16.mxu0 %vm737_vm0, %v736_v0  ;;  %560 = vmatpush3.bf16.msra.mxu0 %v604_v18 }
  0x57   :  { %561 = vmatprep.subr.bf16.mxu0 %v736_v0 }
  0x5a   :  { %562 = vmatpush3.bf16.msra.mxu0 %v605_v19 }
  0x5b   :  { %563 = vmatprep.subr.bf16.mxu0 %v736_v0 }
  0x5e   :  { %564 = vmatpush3.bf16.msra.mxu0 %v606_v20 }
  0x5f   :  { %565 = vmatprep.subr.bf16.mxu0 %v736_v0 }
  0x62   :  { %566 = vmatpush3.bf16.msra.mxu0 %v607_v29 }
  0x63   :  { %567 = vmatprep.subr.bf16.mxu0 %v736_v0 }
  0x66   :  { %568 = vmatpush3.bf16.msra.mxu0 %v608_v30 }
  0x67   :  { %569 = vmatprep.subr.bf16.mxu0 %v736_v0 }
  0x6a   :  { %570 = vmatpush3.bf16.msra.mxu0 %v609_v31 }
  0x6b   :  { %571 = vmatprep.subr.bf16.mxu0 %v736_v0 }
  0x6e   :  { %572 = vmatpush3.bf16.msra.mxu0 %v610_v32 }
  0x6f   :  { %573 = vmatprep.subr.bf16.mxu0 %v736_v0 }
  0x72   :  { %574 = vmatpush3.bf16.msra.mxu0 %v611_v33 }
 0x115   :  { %v190_v22 = vpop.f32.mrf.mxu0 }
 0x116   :  { %v191_v23 = vadd.f32 %v463_v21, %v190_v22 }
 0x117   :  { %v537_v24 = vpop.f32.mrf.mxu0 }
 0x118   :  { %v196_v25 = vmax.f32 %v191_v23, 0.0 }
 0x119   :  { %v193_v26 = vpop.f32.mrf.mxu0 }
 0x11a   :  { %v214_v27 = vpack.c.bf16 %v196_v25, %v196_v25 }
 0x11b   :  { %v538_v28 = vpop.f32.mrf.mxu0 }
 0x11c   :  { %556 = vmatmul.mubr.bf16.vlgmr.msra.gmra.mxu1 %v214_v27 }
 0x1dc   :  { %v303_v35 = vpop.f32.mrf.mxu1 }
 0x1dd   :  { %v304_v36 = vadd.f32 %v472_v34, %v303_v35 }
 0x1de   :  { %v557_v37 = vpop.f32.mrf.mxu1 }
 0x1df   :  { %612 = vtanh.f32 %v304_v36 }
 0x1e0   :  { %v306_v38 = vpop.f32.mrf.mxu1 }
 0x1e2   :  { %v558_v39 = vpop.f32.mrf.mxu1 }
 0x1ec   :  { %v613_v40 = vpop.eup %612 }
 0x1ed   :  { %v327_v41 = vpack.c.bf16 %v613_v40, %v613_v40 }
 0x1ef   :  { %576 = vmatmul.mubr.bf16.vlgmr.msra.gmra.mxu0 %v327_v41 }
 0x2af   :  { %v416_v43 = vpop.f32.mrf.mxu0 }
 0x2b0   :  { %v417_v44 = vadd.f32 %v481_v42, %v416_v43 }
 0x2b1   :  { %v577_v45 = vpop.f32.mrf.mxu0 }
 0x2b2   :  { %v490_v46 = vmul.f32 -1.442695, %v417_v44 }
 0x2b3   :  { %v419_v47 = vpop.f32.mrf.mxu0 }
 0x2b4   :  { %614 = vpow2.f32 %v490_v46 }
 0x2b5   :  { %v578_v48 = vpop.f32.mrf.mxu0 }
 0x2c1   :  { %v615_v49 = vpop.eup %614 }
 0x2c2   :  { %v425_v50 = vadd.f32 1.0, %v615_v49 }
 0x2c4   :  { %616 = vrcp.f32 %v425_v50 }
 0x2d1   :  { %v617_v52 = vpop.eup %616 }
 0x2d2   :  { %v435_v53 = vadd.f32 %v617_v52, %v491_v51 }
 0x2d4   :  { %436 = vmax.xlane.f32.xlu0 %v435_v53 }
 0x35d   :  { %v437_v54 = vpop.xlane.xlu0 %436 }
 0x35e   :  { %v438_v55 = vsub.f32 %v435_v53, %v437_v54 }
 0x360   :  { %v439_v56 = vmul.f32 1.442695, %v438_v55 }
 0x362   :  { %618 = vpow2.f32 %v439_v56 }
 0x36f   :  { %v619_v57 = vpop.eup %618 }
 0x370   :  { %441 = vadd.xlane.f32.xlu0 %v619_v57 }
 0x3f9   :  { %v442_v58 = vpop.xlane.xlu0 %441 }
 0x3fa   :  { %620 = vrcp.f32 %v442_v58 }
 0x407   :  { %v621_v59 = vpop.eup %620 }
 0x408   :  { %v444_v60 = vmul.f32 %v621_v59, %v619_v57 }
 0x40a   :  { %445 = vst [vmem:[#allocation10] sm:$0xff] %v444_v60 }
 0x40b   :  { %713 = shalt.err (!%p710_p10)
}
 0x40c   :  { %455 = dma.vmem_to_hbm [thread:$0]  %s453_s29, 128, %s858_s8, [#allocation4]  }
 0x40d   :  { %728 = dma.done.wait [#allocation4], 128  }
 0x40e   :  { %729 = vsyncadd [#allocation4], 4294967168 }
 0x40f   :  { %459 = vsyncpa [#allocation3], 1 }
 0x410   :  { %460 = vsyncpa [#allocation6], 1 }
 0x411   :  { %461 = vsyncpa [#allocation9], 1 }
 0x412   :  { %462 = vsyncpa [#allocation4], 1 }

// kernel: tpu_custom_call.1
= control target key start
LH: loop header
LB: loop body
LE: loop exit
PB: predicated region body
PF: predicated region fallthrough
CT: control target
= control target key end

     0   :  { %13 = vsyncpa [#allocation3], 0  ;;  %s850_s0 = inlined_call_operand.hbm [shape: bf16[8,128], index: 0, kind: input, shape index: {}]   ;;  %s851_s1 = inlined_call_operand.hbm [shape: bf16[128,128], index: 1, kind: input, shape index: {}]   ;;  %s852_s2 = inlined_call_operand.vmem [shape: f32[1,128], index: 2, kind: input, shape index: {}]   ;;  %s853_s3 = inlined_call_operand.hbm [shape: bf16[128,128], index: 3, kind: input, shape index: {}]   ;;  %s854_s4 = inlined_call_operand.vmem [shape: f32[1,128], index: 4, kind: input, shape index: {}]   ;;  %s855_s5 = inlined_call_operand.hbm [shape: bf16[128,128], index: 5, kind: input, shape index: {}]   ;;  %s856_s6 = inlined_call_operand.vmem [shape: f32[1,128], index: 6, kind: input, shape index: {}]   ;;  %s857_s7 = inlined_call_operand.vmem [shape: f32[1,128], index: 7, kind: input, shape index: {}]   ;;  %s858_s8 = inlined_call_operand.hbm [shape: f32[8,128], index: 8, kind: output, shape index: {}]  }
   0x1   :  { %14 = vsyncpa [#allocation6], 0 }
   0x2   :  { %15 = vsyncpa [#allocation9], 0 }
   0x3   :  { %16 = vsyncpa [#allocation4], 0  ;;  %s730_s27 = smov [#allocation5]  }
   0x4   :  { %s32_s28 = sshll.u32 %s730_s27, 4  ;;  %s33_s28 = int_to_ptr.vmem [resolvable:$true] %s32_s28 }
   0x5   :  { %s630_s29 = scalar_lea.vmem %s33_s28, 1024  ;;  %p635_p1 = scmp.lt.s32.totalorder %s33_s28, %s33_s28 }
   0x6   :  { %p631_p0 = scmp.ne.s32.totalorder %s33_s28, %s630_s29  ;;  %p636_p2 = scmp.lt.s32.totalorder %s630_s29, %s630_s29 }
   0x8   :  { %p637_p3 = por %p636_p2, %p635_p1 }
   0xa   :  { %p638_p4 = pnand %p637_p3, %p631_p0 }
   0xc   :  { %641 = shalt.err (!%p638_p4)
}
   0xd   :  { %s731_s30 = smov 64   ;;  %s732_s9 = smov 4  }
   0xe   :  { %38 = dma.hbm_to_vmem [thread:$0]  %s851_s1, 1024, %s33_s28, [#allocation6], %s731_s30, %s731_s30, %s732_s9  }
   0xf   :  { %s733_s12 = smov [#allocation2]   ;;  %s734_s14 = smov [#allocation7]  }
  0x10   :  { %s23_s13 = sshll.u32 %s733_s12, 4  ;;  %s46_s15 = sshll.u32 %s734_s14, 4  ;;  %s24_s13 = int_to_ptr.vmem [resolvable:$true] %s23_s13  ;;  %s47_s15 = int_to_ptr.vmem [resolvable:$true] %s46_s15 }
  0x11   :  { %s650_s16 = scalar_lea.vmem %s24_s13, 64  ;;  %p655_p6 = scmp.lt.s32.totalorder %s24_s13, %s24_s13 }
  0x12   :  { %p651_p5 = scmp.ne.s32.totalorder %s24_s13, %s650_s16  ;;  %p656_p7 = scmp.lt.s32.totalorder %s650_s16, %s650_s16 }
  0x14   :  { %p657_p8 = por %p656_p7, %p655_p6 }
  0x16   :  { %p658_p9 = pnand %p657_p8, %p651_p5 }
  0x18   :  { %661 = shalt.err (!%p658_p9)
}
  0x19   :  { %26 = dma.hbm_to_vmem [thread:$0]  %s850_s0, 64, %s24_s13, [#allocation3]  }
  0x1a   :  { %s670_s19 = scalar_lea.vmem %s47_s15, 1024  ;;  %p675_p11 = scmp.lt.s32.totalorder %s47_s15, %s47_s15 }
  0x1b   :  { %p671_p10 = scmp.ne.s32.totalorder %s47_s15, %s670_s19  ;;  %p676_p12 = scmp.lt.s32.totalorder %s670_s19, %s670_s19 }
  0x1d   :  { %p677_p13 = por %p676_p12, %p675_p11 }
  0x1f   :  { %p678_p0 = pnand %p677_p13, %p671_p10 }
  0x21   :  { %681 = shalt.err (!%p678_p0)
}
  0x22   :  { %52 = dma.hbm_to_vmem [thread:$0]  %s853_s3, 1024, %s47_s15, [#allocation6], %s731_s30, %s731_s30, %s732_s9  }
  0x23   :  { %s735_s21 = smov [#allocation8]  }
  0x24   :  { %s60_s22 = sshll.u32 %s735_s21, 4  ;;  %s61_s22 = int_to_ptr.vmem [resolvable:$true] %s60_s22 }
  0x25   :  { %s690_s23 = scalar_lea.vmem %s61_s22, 1024  ;;  %p695_p2 = scmp.lt.s32.totalorder %s61_s22, %s61_s22 }
  0x26   :  { %p691_p1 = scmp.ne.s32.totalorder %s61_s22, %s690_s23  ;;  %p696_p3 = scmp.lt.s32.totalorder %s690_s23, %s690_s23 }
  0x28   :  { %p697_p4 = por %p696_p3, %p695_p2 }
  0x2a   :  { %p698_p5 = pnand %p697_p4, %p691_p1 }
  0x2c   :  { %701 = shalt.err (!%p698_p5)
}
  0x2d   :  { %66 = dma.hbm_to_vmem [thread:$0]  %s855_s5, 1024, %s61_s22, [#allocation9], %s731_s30, %s731_s30, %s732_s9  }
  0x2e   :  { %722 = dma.done.wait [#allocation3], 64  }
  0x2f   :  { %723 = vsyncadd [#allocation3], 4294967232 }
  0x30   :  { %724 = dma.done.wait [#allocation6], 2048  }
  0x31   :  { %725 = vsyncadd [#allocation6], 4294965248 }
  0x32   :  { %726 = dma.done.wait [#allocation9], 1024  }
  0x33   :  { %727 = vsyncadd [#allocation9], 4294966272  ;;  %v736_v0 = vmov 0.0   ;;  %vm737_vm0 = vmmov 0   ;;  %v588_v1 = vld [vmem:[#allocation5 + $0x38] sm:$0xff]   ;;  %v589_v2 = vld [vmem:[#allocation5 + $0x30] sm:$0xff]  }
  0x34   :  { %519 = vmatprep.subr.bf16.mxu0 %v736_v0  ;;  %535 = vmatprep.mubr.msk.bf16.mxu0 %vm737_vm0, %v736_v0  ;;  %v590_v3 = vld [vmem:[#allocation5 + $0x28] sm:$0xff]   ;;  %v596_v4 = vld [vmem:[#allocation7 + $0x38] sm:$0xff]   ;;  %v591_v5 = vld [vmem:[#allocation5 + $0x20] sm:$0xff]  }
  0x35   :  { %539 = vmatprep.subr.bf16.mxu1 %v736_v0  ;;  %555 = vmatprep.mubr.msk.bf16.mxu1 %vm737_vm0, %v736_v0  ;;  %v597_v6 = vld [vmem:[#allocation7 + $0x30] sm:$0xff]   ;;  %v592_v7 = vld [vmem:[#allocation5 + $0x18] sm:$0xff]   ;;  %v598_v8 = vld [vmem:[#allocation7 + $0x28] sm:$0xff]  }
  0x36   :  { %520 = vmatpush3.bf16.msra.mxu0 %v588_v1  ;;  %540 = vmatpush3.bf16.msra.mxu1 %v596_v4  ;;  %v593_v9 = vld [vmem:[#allocation5 + $0x10] sm:$0xff]   ;;  %v599_v10 = vld [vmem:[#allocation7 + $0x20] sm:$0xff]   ;;  %v594_v11 = vld [vmem:[#allocation5 + $0x8] sm:$0xff]  }
  0x37   :  { %521 = vmatprep.subr.bf16.mxu0 %v736_v0  ;;  %541 = vmatprep.subr.bf16.mxu1 %v736_v0  ;;  %v600_v12 = vld [vmem:[#allocation7 + $0x18] sm:$0xff]   ;;  %v595_v13 = vld [vmem:[#allocation5] sm:$0xff]   ;;  %v601_v14 = vld [vmem:[#allocation7 + $0x10] sm:$0xff]  }
  0x38   :  { %v84_v15 = vld [vmem:[#allocation2] sm:$0xf]  ;;  %v602_v16 = vld [vmem:[#allocation7 + $0x8] sm:$0xff]   ;;  %v603_v17 = vld [vmem:[#allocation7] sm:$0xff]  }
  0x39   :  { %v604_v18 = vld [vmem:[#allocation8 + $0x38] sm:$0xff]   ;;  %v605_v19 = vld [vmem:[#allocation8 + $0x30] sm:$0xff]   ;;  %v606_v20 = vld [vmem:[#allocation8 + $0x28] sm:$0xff]  }
  0x3a   :  { %522 = vmatpush3.bf16.msra.mxu0 %v589_v2  ;;  %542 = vmatpush3.bf16.msra.mxu1 %v597_v6  ;;  %v463_v21 = vld [vmem:[%s852_s2] ss:$0 sm:$0xff]  ;;  %v607_v29 = vld [vmem:[#allocation8 + $0x20] sm:$0xff]   ;;  %v609_v31 = vld [vmem:[#allocation8 + $0x10] sm:$0xff]  }
  0x3b   :  { %523 = vmatprep.subr.bf16.mxu0 %v736_v0  ;;  %543 = vmatprep.subr.bf16.mxu1 %v736_v0  ;;  %v608_v30 = vld [vmem:[#allocation8 + $0x18] sm:$0xff]   ;;  %v610_v32 = vld [vmem:[#allocation8 + $0x8] sm:$0xff]   ;;  %v611_v33 = vld [vmem:[#allocation8] sm:$0xff]  }
  0x3c   :  { %v472_v34 = vld [vmem:[%s854_s4] ss:$0 sm:$0xff] }
  0x3d   :  { %v481_v42 = vld [vmem:[%s856_s6] ss:$0 sm:$0xff]  ;;  %s738_s6 = smov [#allocation10]  }
  0x3e   :  { %524 = vmatpush3.bf16.msra.mxu0 %v590_v3  ;;  %544 = vmatpush3.bf16.msra.mxu1 %v598_v8  ;;  %v491_v51 = vld [vmem:[%s857_s7] ss:$0 sm:$0xff]  ;;  %s452_s29 = sshll.u32 %s738_s6, 4  ;;  %s453_s29 = int_to_ptr.vmem [resolvable:$true] %s452_s29 }
  0x3f   :  { %525 = vmatprep.subr.bf16.mxu0 %v736_v0  ;;  %545 = vmatprep.subr.bf16.mxu1 %v736_v0  ;;  %s702_s30 = scalar_lea.vmem %s453_s29, 128  ;;  %p707_p7 = scmp.lt.s32.totalorder %s453_s29, %s453_s29 }
  0x40   :  { %p703_p6 = scmp.ne.s32.totalorder %s453_s29, %s702_s30  ;;  %p708_p8 = scmp.lt.s32.totalorder %s702_s30, %s702_s30 }
  0x42   :  { %526 = vmatpush3.bf16.msra.mxu0 %v591_v5  ;;  %546 = vmatpush3.bf16.msra.mxu1 %v599_v10  ;;  %p709_p9 = por %p708_p8, %p707_p7 }
  0x43   :  { %527 = vmatprep.subr.bf16.mxu0 %v736_v0  ;;  %547 = vmatprep.subr.bf16.mxu1 %v736_v0 }
  0x44   :  { %p710_p10 = pnand %p709_p9, %p703_p6 }
  0x46   :  { %528 = vmatpush3.bf16.msra.mxu0 %v592_v7  ;;  %548 = vmatpush3.bf16.msra.mxu1 %v600_v12 }
  0x47   :  { %529 = vmatprep.subr.bf16.mxu0 %v736_v0  ;;  %549 = vmatprep.subr.bf16.mxu1 %v736_v0 }
  0x4a   :  { %530 = vmatpush3.bf16.msra.mxu0 %v593_v9  ;;  %550 = vmatpush3.bf16.msra.mxu1 %v601_v14 }
  0x4b   :  { %531 = vmatprep.subr.bf16.mxu0 %v736_v0  ;;  %551 = vmatprep.subr.bf16.mxu1 %v736_v0 }
  0x4e   :  { %532 = vmatpush3.bf16.msra.mxu0 %v594_v11  ;;  %552 = vmatpush3.bf16.msra.mxu1 %v602_v16 }
  0x4f   :  { %533 = vmatprep.subr.bf16.mxu0 %v736_v0  ;;  %553 = vmatprep.subr.bf16.mxu1 %v736_v0 }
  0x52   :  { %534 = vmatpush3.bf16.msra.mxu0 %v595_v13  ;;  %554 = vmatpush3.bf16.msra.mxu1 %v603_v17 }
  0x53   :  { %559 = vmatprep.subr.bf16.mxu0 %v736_v0 }
  0x55   :  { %536 = vmatmul.mubr.bf16.vlgmr.msra.gmra.mxu0 %v84_v15 }
  0x56   :  { %575 = vmatprep.mubr.msk.bf16.mxu0 %vm737_vm0, %v736_v0  ;;  %560 = vmatpush3.bf16.msra.mxu0 %v604_v18 }
  0x57   :  { %561 = vmatprep.subr.bf16.mxu0 %v736_v0 }
  0x5a   :  { %562 = vmatpush3.bf16.msra.mxu0 %v605_v19 }
  0x5b   :  { %563 = vmatprep.subr.bf16.mxu0 %v736_v0 }
  0x5e   :  { %564 = vmatpush3.bf16.msra.mxu0 %v606_v20 }
  0x5f   :  { %565 = vmatprep.subr.bf16.mxu0 %v736_v0 }
  0x62   :  { %566 = vmatpush3.bf16.msra.mxu0 %v607_v29 }
  0x63   :  { %567 = vmatprep.subr.bf16.mxu0 %v736_v0 }
  0x66   :  { %568 = vmatpush3.bf16.msra.mxu0 %v608_v30 }
  0x67   :  { %569 = vmatprep.subr.bf16.mxu0 %v736_v0 }
  0x6a   :  { %570 = vmatpush3.bf16.msra.mxu0 %v609_v31 }
  0x6b   :  { %571 = vmatprep.subr.bf16.mxu0 %v736_v0 }
  0x6e   :  { %572 = vmatpush3.bf16.msra.mxu0 %v610_v32 }
  0x6f   :  { %573 = vmatprep.subr.bf16.mxu0 %v736_v0 }
  0x72   :  { %574 = vmatpush3.bf16.msra.mxu0 %v611_v33 }
 0x115   :  { %v190_v22 = vpop.f32.mrf.mxu0 }
 0x116   :  { %v191_v23 = vadd.f32 %v463_v21, %v190_v22 }
 0x117   :  { %v537_v24 = vpop.f32.mrf.mxu0 }
 0x118   :  { %v196_v25 = vmax.f32 %v191_v23, 0.0 }
 0x119   :  { %v193_v26 = vpop.f32.mrf.mxu0 }
 0x11a   :  { %v214_v27 = vpack.c.bf16 %v196_v25, %v196_v25 }
 0x11b   :  { %v538_v28 = vpop.f32.mrf.mxu0 }
 0x11c   :  { %556 = vmatmul.mubr.bf16.vlgmr.msra.gmra.mxu1 %v214_v27 }
 0x1dc   :  { %v303_v35 = vpop.f32.mrf.mxu1 }
 0x1dd   :  { %v304_v36 = vadd.f32 %v472_v34, %v303_v35 }
 0x1de   :  { %v557_v37 = vpop.f32.mrf.mxu1 }
 0x1df   :  { %612 = vtanh.f32 %v304_v36 }
 0x1e0   :  { %v306_v38 = vpop.f32.mrf.mxu1 }
 0x1e2   :  { %v558_v39 = vpop.f32.mrf.mxu1 }
 0x1ec   :  { %v613_v40 = vpop.eup %612 }
 0x1ed   :  { %v327_v41 = vpack.c.bf16 %v613_v40, %v613_v40 }
 0x1ef   :  { %576 = vmatmul.mubr.bf16.vlgmr.msra.gmra.mxu0 %v327_v41 }
 0x2af   :  { %v416_v43 = vpop.f32.mrf.mxu0 }
 0x2b0   :  { %v417_v44 = vadd.f32 %v481_v42, %v416_v43 }
 0x2b1   :  { %v577_v45 = vpop.f32.mrf.mxu0 }
 0x2b2   :  { %v490_v46 = vmul.f32 -1.442695, %v417_v44 }
 0x2b3   :  { %v419_v47 = vpop.f32.mrf.mxu0 }
 0x2b4   :  { %614 = vpow2.f32 %v490_v46 }
 0x2b5   :  { %v578_v48 = vpop.f32.mrf.mxu0 }
 0x2c1   :  { %v615_v49 = vpop.eup %614 }
 0x2c2   :  { %v425_v50 = vadd.f32 1.0, %v615_v49 }
 0x2c4   :  { %616 = vrcp.f32 %v425_v50 }
 0x2d1   :  { %v617_v52 = vpop.eup %616 }
 0x2d2   :  { %v435_v53 = vadd.f32 %v617_v52, %v491_v51 }
 0x2d4   :  { %436 = vmax.xlane.f32.xlu0 %v435_v53 }
 0x35d   :  { %v437_v54 = vpop.xlane.xlu0 %436 }
 0x35e   :  { %v438_v55 = vsub.f32 %v435_v53, %v437_v54 }
 0x360   :  { %v439_v56 = vmul.f32 1.442695, %v438_v55 }
 0x362   :  { %618 = vpow2.f32 %v439_v56 }
 0x36f   :  { %v619_v57 = vpop.eup %618 }
 0x370   :  { %441 = vadd.xlane.f32.xlu0 %v619_v57 }
 0x3f9   :  { %v442_v58 = vpop.xlane.xlu0 %441 }
 0x3fa   :  { %620 = vrcp.f32 %v442_v58 }
 0x407   :  { %v621_v59 = vpop.eup %620 }
 0x408   :  { %v444_v60 = vmul.f32 %v621_v59, %v619_v57 }
 0x40a   :  { %445 = vst [vmem:[#allocation10] sm:$0xff] %v444_v60 }
 0x40b   :  { %713 = shalt.err (!%p710_p10)
}
 0x40c   :  { %455 = dma.vmem_to_hbm [thread:$0]  %s453_s29, 128, %s858_s8, [#allocation4]  }
 0x40d   :  { %728 = dma.done.wait [#allocation4], 128  }
 0x40e   :  { %729 = vsyncadd [#allocation4], 4294967168 }
 0x40f   :  { %459 = vsyncpa [#allocation3], 1 }
 0x410   :  { %460 = vsyncpa [#allocation6], 1 }
 0x411   :  { %461 = vsyncpa [#allocation9], 1 }
 0x412   :  { %462 = vsyncpa [#allocation4], 1 }

</bundles_post_ra>
